<compile_context>
chip_gen: v5e
topology: v5e:2x2
jax: 0.10.0
libtpu: 0.0.40
codegen_flags: <defaults>
</compile_context>

<pallas_src>
import jax
import jax.numpy as jnp
from jax import lax
from jax.experimental import pallas as pl
from jax.experimental.pallas import tpu as pltpu


_TILE_BYTES = 4 << 20          # per input buffer; double-buffered -> <= 8 MiB VMEM
_MAX_TB = 128                  # batch rows per tile (vreg-pressure bound of the chunk loop)
_PALLAS_MIN_BYTES = 8 << 20    # below this, XLA's fused square-sum reduction wins


def _round_up(x, m):
    return ((x + m - 1) // m) * m


def _make_gp_kernel(D, TB, TD):
    """Build the per-(TB, TD)-tile kernel. D/TB/TD are static Python ints."""
    n_full = TD // 128           # full 128-lane chunks per tile
    rem = TD % 128               # ragged lane tail; only possible when TD == D (one D step)
    need_mask = (D % TD) != 0    # last D tile reads past column D -> mask garbage columns
    assert not (rem and need_mask)
    if rem:
        assert TD == D

    def kernel(g_ref, per_ref, sumsq_ref, acc_ref):
        d = pl.program_id(1)

        @pl.when(d == 0)
        def _init():
            acc_ref[...] = jnp.zeros_like(acc_ref)

        col_base = d * TD        # global column offset of this tile

        # ---- steady state: stream 128-lane chunks; squares accumulate on the VPU only
        if n_full > 0:
            def body(c, acc):
                start = pl.multiple_of(c * 128, 128)
                chunk = g_ref[:, pl.ds(start, 128)].astype(jnp.float32)
                if need_mask:
                    col = col_base + start + lax.broadcasted_iota(jnp.int32, (1, 128), 1)
                    chunk = jnp.where(col < D, chunk, 0.0)   # zero garbage past column D
                return acc + chunk * chunk

            partial = lax.fori_loop(0, n_full, body,
                                    jnp.zeros((TB, 128), jnp.float32))
            acc_ref[...] += partial

        # ---- ragged lane tail (< 128 cols); only when the whole row fits one tile
        if rem > 0:
            tail = g_ref[:, pl.ds(n_full * 128, rem)].astype(jnp.float32)
            tail_sumsq = jnp.sum(tail * tail, axis=1, keepdims=True)     # (TB, 1)
        else:
            tail_sumsq = None

        # ---- finalize: one cross-lane (XLU) reduce + sqrt per batch block
        @pl.when(d == pl.num_programs(1) - 1)
        def _finalize():
            sumsq = jnp.sum(acc_ref[...], axis=1, keepdims=True)
            if tail_sumsq is not None:
                sumsq = sumsq + tail_sumsq
            norm = jnp.sqrt(sumsq)
            per_ref[...] = (norm - 1.0) ** 2
            sumsq_ref[...] = sumsq

    return kernel


def _gp_loss_sumsq_pallas(g_flat, tile_bytes=_TILE_BYTES):
    """Pallas-backed forward: (B, D) gradient -> (scalar f32 loss, (B,) f32 sum-of-squares)."""
    B, D = g_flat.shape
    itemsize = jnp.dtype(g_flat.dtype).itemsize

    # Batch tile: full B when tiny; otherwise a multiple of 8, sized so the batch axis
    # has >= 2 blocks (keeps both v7x TensorCores streaming; on v5e/v6e the extra grid
    # step costs ~0.35 us, negligible at multi-MiB tiles).
    if B <= 8:
        TB = B
    else:
        TB = min(_MAX_TB, _round_up(pl.cdiv(B, 2), 8))

    # Lane tile: as many lanes as the per-buffer VMEM budget allows (multiple of 128),
    # or the full row when it fits.  No jnp.pad of the gradient: a ragged last D tile is
    # masked in-kernel, a ragged last batch block is clipped by the output DMA.
    max_lanes = max(128, (tile_bytes // (TB * itemsize)) // 128 * 128)
    TD = D if D <= max_lanes else max_lanes

    nb = pl.cdiv(B, TB)
    nd = pl.cdiv(D, TD)

    per, sumsq = pl.pallas_call(
        _make_gp_kernel(D, TB, TD),
        out_shape=(
            jax.ShapeDtypeStruct((B, 1), jnp.float32),
            jax.ShapeDtypeStruct((B, 1), jnp.float32),
        ),
        grid_spec=pltpu.PrefetchScalarGridSpec(
            num_scalar_prefetch=0,
            grid=(nb, nd),
            in_specs=[pl.BlockSpec((TB, TD), lambda b, d: (b, d))],
            out_specs=[
                pl.BlockSpec((TB, 1), lambda b, d: (b, 0)),
                pl.BlockSpec((TB, 1), lambda b, d: (b, 0)),
            ],
            scratch_shapes=[pltpu.VMEM((TB, 128), jnp.float32)],
        ),
        compiler_params=pltpu.CompilerParams(
            # Batch blocks are independent -> shard across the 2 TCs on v7x;
            # the D axis is the reduction (accumulator-resident output) -> arbitrary.
            dimension_semantics=("parallel", "arbitrary"),
            vmem_limit_bytes=32 * 1024 * 1024,   # headroom; tiles already fit defaults
        ),
        cost_estimate=pl.CostEstimate(
            flops=2 * B * D,
            transcendentals=B,
            bytes_accessed=B * D * itemsize + 8 * B,
        ),
    )(g_flat)

    loss = jnp.mean(per[:, 0])
    return loss, sumsq[:, 0]


# ----------------------------------------------------------------------------------
# Differentiable wrapper (analytic VJP so the penalty is usable for GP training).
# ----------------------------------------------------------------------------------
@jax.custom_vjp
def _gp_loss_pallas_op(g_flat):
    loss, _ = _gp_loss_sumsq_pallas(g_flat)
    return loss


def _gp_fwd(g_flat):
    loss, sumsq = _gp_loss_sumsq_pallas(g_flat)
    return loss, (g_flat, sumsq)


def _gp_bwd(res, ct):
    g_flat, sumsq = res
    B = g_flat.shape[0]
    norm = jnp.sqrt(sumsq)                                   # (B,)
    safe = jnp.where(norm > 0.0, norm, 1.0)
    coef = (2.0 / B) * (norm - 1.0) / safe                   # d/dg of mean((norm-1)^2)
    coef = jnp.where(norm > 0.0, coef, 0.0) * ct             # (B,)
    dg = coef[:, None] * g_flat.astype(jnp.float32)
    return (dg.astype(g_flat.dtype),)


_gp_loss_pallas_op.defvjp(_gp_fwd, _gp_bwd)


def _gp_loss_jnp(g_flat):
    """Plain-jnp reference / small-size path (fully differentiable)."""
    norm = jnp.sqrt(jnp.sum(jnp.square(g_flat.astype(jnp.float32)), axis=1))
    return jnp.mean((norm - 1.0) ** 2)


def gradient_penalty_loss_from_grad(g_flat, use_pallas=None):
    """mean((||g_b||_2 - 1)^2) for a (B, D) flattened gradient."""
    B, D = g_flat.shape
    if use_pallas is None:
        use_pallas = B * D * jnp.dtype(g_flat.dtype).itemsize >= _PALLAS_MIN_BYTES
    return _gp_loss_pallas_op(g_flat) if use_pallas else _gp_loss_jnp(g_flat)


def gradient_penalty_loss(critic_fn, interp, use_pallas=None):
    """Full forward of GradientPenaltyLoss.

    critic_fn : differentiable function interp -> interp_crit (any output shape)
    interp    : (B, C, H, W)  (NCHW, matching the PyTorch convention)
    """
    # torch.autograd.grad(interp_crit, interp, grad_outputs=ones) == VJP with ones cotangent.
    interp_crit, vjp_fn = jax.vjp(critic_fn, interp)
    grad_outputs = jnp.ones_like(interp_crit)        # the module's all-ones buffer
    (grad_interp,) = vjp_fn(grad_outputs)
    grad_flat = grad_interp.reshape(grad_interp.shape[0], -1)   # .view(B, -1), native dtype
    return gradient_penalty_loss_from_grad(grad_flat, use_pallas=use_pallas)


if __name__ == "__main__":
    key = jax.random.PRNGKey(0)
    k_interp, k_w, k_g, k_o = jax.random.split(key, 4)

    # Small shapes consistent with an image-critic setting.
    B, C, H, W = 2, 4, 16, 16
    interp = jax.random.normal(k_interp, (B, C, H, W), dtype=jnp.float32)

    # Deterministic synthetic "critic": the module itself has no parameters; the critic
    # is external, so build a fixed linear one in-script for the autodiff step.
    crit_w = jax.random.normal(k_w, (1, C, H, W), dtype=jnp.float32) * 0.05

    def critic_fn(x):
        return jnp.sum(x * crit_w, axis=(1, 2, 3))   # per-sample scalar score, (B,)

    # --- forward through the Pallas kernel (forced: auto-dispatch would pick the
    #     plain-jnp path at this tiny demo size) ---
    loss = gradient_penalty_loss(critic_fn, interp, use_pallas=True)
    loss = jax.block_until_ready(loss)

    # pure-JAX reference of the whole pipeline
    interp_crit_ref, vjp_fn = jax.vjp(critic_fn, interp)
    (g_ref,) = vjp_fn(jnp.ones_like(interp_crit_ref))
    g_ref = g_ref.reshape(B, -1)
    ref_loss = jnp.mean((jnp.linalg.norm(g_ref, axis=1) - 1.0) ** 2)
    assert jnp.allclose(loss, ref_loss, rtol=1e-5, atol=1e-6), (loss, ref_loss)

    # --- backward through the Pallas path (custom VJP) vs. plain-jnp autodiff ---
    g_test = jax.random.normal(k_g, (B, C * H * W), dtype=jnp.float32)
    grad_pallas = jax.block_until_ready(jax.grad(_gp_loss_pallas_op)(g_test))
    grad_ref = jax.grad(_gp_loss_jnp)(g_test)
    assert jnp.allclose(grad_pallas, grad_ref, rtol=1e-5, atol=1e-6)

    # --- odd batch / non-128 D: exercises the ragged lane-tail path (single D block) ---
    g_odd = jax.random.normal(k_g, (3, 1000), dtype=jnp.float32)
    odd_loss = jax.block_until_ready(_gp_loss_pallas_op(g_odd))
    assert jnp.allclose(odd_loss, _gp_loss_jnp(g_odd), rtol=1e-5, atol=1e-6)

    # --- multi-tile path: a tiny tile budget forces several D steps, an in-kernel-masked
    #     ragged last D tile and a clipped ragged last batch block (exercises the
    #     large-gradient code path at a small demo size) ---
    g_big = jax.random.normal(k_o, (20, 600), dtype=jnp.float32)
    tiled_loss, _ = _gp_loss_sumsq_pallas(g_big, tile_bytes=8192)
    tiled_loss = jax.block_until_ready(tiled_loss)
    assert jnp.allclose(tiled_loss, _gp_loss_jnp(g_big), rtol=1e-5, atol=1e-6)

    print("KERNEL_OK")
</pallas_src>

<mosaic_0001>
module attributes {stable_mosaic.version = 11 : i64} {
  func.func @kernel(%arg0: i32, %arg1: i32, %arg2: memref<2x1024xf32, #tpu.memory_space<vmem>>, %arg3: memref<2x1xf32, #tpu.memory_space<vmem>>, %arg4: memref<2x1xf32, #tpu.memory_space<vmem>>, %arg5: memref<2x128xf32, #tpu.memory_space<vmem>>) attributes {dimension_semantics = [#tpu.dimension_semantics<parallel>, #tpu.dimension_semantics<arbitrary>], iteration_bounds = array<i64: 1, 1>, scalar_prefetch = 0 : i64, scratch_operands = 1 : i64, tpu.core_type = #tpu.core_type<tc>, window_params = [{transform_indices = @transform_0, window_bounds = array<i64: 2, 1024>}, {transform_indices = @transform_1, window_bounds = array<i64: 2, 1>}, {transform_indices = @transform_2, window_bounds = array<i64: 2, 1>}]} {
    %c0_i32 = arith.constant 0 : i32
    %0 = arith.cmpi eq, %arg1, %c0_i32 : i32
    %1 = arith.extui %0 : i1 to i32
    %c0_i32_0 = arith.constant 0 : i32
    %2 = arith.cmpi ne, %1, %c0_i32_0 : i32
    scf.if %2 {
      %cst_8 = arith.constant 0.000000e+00 : f32
      %12 = vector.broadcast %cst_8 : f32 to vector<2x128xf32>
      %c0_9 = arith.constant 0 : index
      %c0_10 = arith.constant 0 : index
      %13 = vector.load %arg5[%c0_9, %c0_10] : memref<2x128xf32, #tpu.memory_space<vmem>>, vector<2x128xf32>
      tpu.vector_store %arg5[%c0_9, %c0_10], %12 {strides = array<i32>} : memref<2x128xf32, #tpu.memory_space<vmem>>, vector<2x128xf32>,
    } else {
    }
    %cst = arith.constant 0.000000e+00 : f32
    %3 = vector.broadcast %cst : f32 to vector<2x128xf32>
    %c0_i32_1 = arith.constant 0 : i32
    %c8_i32 = arith.constant 8 : i32
    %4 = arith.addi %c0_i32_1, %c8_i32 : i32
    %c1_i32 = arith.constant 1 : i32
    %5 = scf.for %arg6 = %c0_i32_1 to %4 step %c1_i32 iter_args(%arg7 = %3) -> (vector<2x128xf32>)  : i32 {
      %c128_i32 = arith.constant 128 : i32
      %12 = arith.muli %arg6, %c128_i32 : i32
      %13 = tpu.assume_multiple %12, 128 : i32
      %c0_8 = arith.constant 0 : index
      %14 = arith.index_cast %13 : i32 to index
      %15 = vector.load %arg2[%c0_8, %14] : memref<2x1024xf32, #tpu.memory_space<vmem>>, vector<2x128xf32>
      %16 = arith.mulf %15, %15 : vector<2x128xf32>
      %17 = arith.addf %arg7, %16 : vector<2x128xf32>
      scf.yield %17 : vector<2x128xf32>
    }
    %c8_i32_2 = arith.constant 8 : i32
    %c0 = arith.constant 0 : index
    %c0_3 = arith.constant 0 : index
    %6 = vector.load %arg5[%c0, %c0_3] : memref<2x128xf32, #tpu.memory_space<vmem>>, vector<2x128xf32>
    %7 = arith.addf %6, %5 : vector<2x128xf32>
    %c0_4 = arith.constant 0 : index
    %c0_5 = arith.constant 0 : index
    %8 = vector.load %arg5[%c0_4, %c0_5] : memref<2x128xf32, #tpu.memory_space<vmem>>, vector<2x128xf32>
    tpu.vector_store %arg5[%c0_4, %c0_5], %7 {strides = array<i32>} : memref<2x128xf32, #tpu.memory_space<vmem>>, vector<2x128xf32>,
    %c0_i32_6 = arith.constant 0 : i32
    %9 = arith.cmpi eq, %arg1, %c0_i32_6 : i32
    %10 = arith.extui %9 : i1 to i32
    %c0_i32_7 = arith.constant 0 : i32
    %11 = arith.cmpi ne, %10, %c0_i32_7 : i32
    scf.if %11 {
      %c0_8 = arith.constant 0 : index
      %c0_9 = arith.constant 0 : index
      %12 = vector.load %arg5[%c0_8, %c0_9] : memref<2x128xf32, #tpu.memory_space<vmem>>, vector<2x128xf32>
      %cst_10 = arith.constant dense<0.000000e+00> : vector<2xf32>
      %13 = vector.multi_reduction <add>, %12, %cst_10 [1] : vector<2x128xf32> to vector<2xf32>
      %14 = vector.shape_cast %13 : vector<2xf32> to vector<2x1xf32>
      %15 = math.sqrt %14 : vector<2x1xf32>
      %cst_11 = arith.constant 1.000000e+00 : f32
      %16 = vector.broadcast %cst_11 : f32 to vector<2x1xf32>
      %17 = arith.subf %15, %16 : vector<2x1xf32>
      %18 = arith.mulf %17, %17 : vector<2x1xf32>
      %c0_12 = arith.constant 0 : index
      %c0_13 = arith.constant 0 : index
      %19 = vector.load %arg3[%c0_12, %c0_13] : memref<2x1xf32, #tpu.memory_space<vmem>>, vector<2x1xf32>
      tpu.vector_store %arg3[%c0_12, %c0_13], %18 {strides = array<i32>} : memref<2x1xf32, #tpu.memory_space<vmem>>, vector<2x1xf32>,
      %c0_14 = arith.constant 0 : index
      %c0_15 = arith.constant 0 : index
      %20 = vector.load %arg4[%c0_14, %c0_15] : memref<2x1xf32, #tpu.memory_space<vmem>>, vector<2x1xf32>
      tpu.vector_store %arg4[%c0_14, %c0_15], %14 {strides = array<i32>} : memref<2x1xf32, #tpu.memory_space<vmem>>, vector<2x1xf32>,
    } else {
    }
    return
  }
  func.func @transform_0(%arg0: i32, %arg1: i32) -> (i32, i32) {
    %c0_i32 = arith.constant 0 : i32
    return %arg0, %arg1 : i32, i32
  }
  func.func @transform_1(%arg0: i32, %arg1: i32) -> (i32, i32) {
    %c0_i32 = arith.constant 0 : i32
    %c0_i32_0 = arith.constant 0 : i32
    return %arg0, %c0_i32 : i32, i32
  }
  func.func @transform_2(%arg0: i32, %arg1: i32) -> (i32, i32) {
    %c0_i32 = arith.constant 0 : i32
    %c0_i32_0 = arith.constant 0 : i32
    return %arg0, %c0_i32 : i32, i32
  }
}

</mosaic_0001>

<bundles_post_ra>
// kernel: tpu_custom_call.1
= control target key start
LH: loop header
LB: loop body
LE: loop exit
PB: predicated region body
PF: predicated region fallthrough
CT: control target
= control target key end

     0   :  { %8 = vsyncpa [#allocation4], 0  ;;  %s156_s12 = smov [#allocation3]   ;;  %s184_s0 = inlined_call_operand.hbm [shape: f32[2,1024], index: 0, kind: input, shape index: {}]   ;;  %s185_s1 = inlined_call_operand.vmem [shape: f32[2,1], index: 1, kind: output, shape index: {0}]   ;;  %s186_s2 = inlined_call_operand.vmem [shape: f32[2,1], index: 2, kind: output, shape index: {1}]  }
   0x1   :  { %s14_s11 = sshll.u32 %s184_s0, 4  ;;  %s16_s13 = sshll.u32 %s156_s12, 4  ;;  %s15_s11 = int_to_ptr.hbm [resolvable:$true] %s14_s11  ;;  %s17_s13 = int_to_ptr.vmem [resolvable:$true] %s16_s13 }
   0x2   :  { %19 = dma.hbm_to_vmem [thread:$0]  %s15_s11, 256, %s17_s13, [#allocation4]  }
   0x3   :  { %146 = dma.done.wait [#allocation4], 256  }
   0x4   :  { %147 = vsyncadd [#allocation4], 4294967040  ;;  %v157_v0 = vmov 0.0   ;;  %v148_v1 = vmov 0.0   ;;  %s152_s14 = smov 0  }
   0x5   :  { %28 = vst [vmem:[#allocation2] sm:$0x3] %v157_v0 }
   0x6 LB: > { %s91_s15 = sshll.u32 %s154_s14, 7  ;;  %s34_s14 = sadd.s32 1, %s154_s14   ;;  %s154_s14 = sphi %s152_s14, %s34_s14   ;;  %v150_v1 = vphi %v148_v1, %v149_v1  }
   0x7   : > { %s37_s16 = sshra.s32 %s91_s15, 7  ;;  %p31_p0 = scmp.ge.s32.totalorder %s34_s14, 8  }
   0x8   : > { %s92_s17 = sshll.u32 %s37_s16, 1  ;;  %vm51_vm0 = vcmask (%p31_p0), 1041408   ;;  %vm69_vm1 = vcmask (%p31_p0), 1024  }
   0x9   : > { %s40_s18 = scalar_lea.vmem [#allocation3], %s92_s17 }
   0xa   : > { %v41_v2 = vld [vmem:[%s40_s18] sm:$0x3] }
   0xb   : > { %v42_v3 = vmul.f32 %v41_v2, %v41_v2  ;;  %33 = sbr.rel (!%p31_p0) target bundleno = 6 (0x6), region = 52 }
   0xc   :  { %v44_v5 = vld [vmem:[#allocation2] sm:$0x3] (%p31_p0) }
   0xd   : > { %v43_v4 = vadd.f32 %v150_v1, %v42_v3  }
   0xf   : > { %v149_v1 = vmov %v43_v4   ;;  %v45_v6 = vadd.f32 (%p31_p0), %v44_v5, %v43_v4 }
  0x11   :  { %46 = vst [vmem:[#allocation2] sm:$0x3] %v45_v6 }
  0x18   :  { %v50_v7 = vld [vmem:[#allocation2] sm:$0x3] }
  0x19   :  { %v52_v8 = vsel %vm51_vm0, %v50_v7, 0.0 }
  0x1a   :  { %53 = vadd.xlane.f32.xlu0 %v52_v8 }
  0x8d   :  { %v54_v9 = vpop.xlane.xlu0 %53 }
  0x8e   :  { %112 = vrsqrt.f32 %v54_v9  ;;  %71 = vst.msk [vmem:[%s186_s2] sm:$0x3] %vm69_vm1, %v54_v9  ;;  %vm62_vm2 = vcmp.eq.f32.partialorder %v54_v9, inf  ;;  %v65_v17 = vand.u32 2147483648, %v54_v9  ;;  %vm64_vm3 = vcmp.eq.f32.partialorder %v54_v9, 0.0 }
  0x94   :  { %v113_v10 = vpop.eup %112 }
  0x95   :  { %v56_v11 = vmul.f32 %v113_v10, %v54_v9 }
  0x97   :  { %v57_v12 = vmul.f32 %v113_v10, %v56_v11 }
  0x99   :  { %v58_v13 = vmul.f32 0.5, %v57_v12 }
  0x9b   :  { %v59_v14 = vsub.f32 1.5, %v58_v13 }
  0x9d   :  { %v60_v15 = vmul.f32 %v113_v10, %v59_v14 }
  0x9f   :  { %v61_v16 = vmul.f32 %v60_v15, %v54_v9 }
  0xa1   :  { %v63_v18 = vsel %vm62_vm2, %v54_v9, %v61_v16 }
  0xa2   :  { %v66_v19 = vsel %vm64_vm3, %v65_v17, %v63_v18 }
  0xa3   :  { %v93_v20 = vadd.f32 -1.0, %v66_v19 }
  0xa5   :  { %v68_v21 = vmul.f32 %v93_v20, %v93_v20 }
  0xa7   :  { %70 = vst.msk [vmem:[%s185_s1] sm:$0x3] %vm69_vm1, %v68_v21 }
  0xa8   :  { %80 = vsyncpa [#allocation4], 1 }

</bundles_post_ra>
